<compile_context>
chip_gen: v6e
topology: v6e:2x2x1
jax: 0.10.0
libtpu: 0.0.40
codegen_flags: <defaults>
</compile_context>

<pallas_src>
import jax
import jax.numpy as jnp
from jax import lax
from jax.experimental import pallas as pl
from jax.experimental.pallas import tpu as pltpu


_LANE = 128


# ------------------------------------------------------------------------
# Pallas kernel: elementwise magnitude-threshold masking
#   out = where(|x| >= thr, x, 0)
# thr arrives via scalar prefetch (SMEM); data keeps its original dtype.
# ------------------------------------------------------------------------
def _topk_mask_kernel(thr_ref, x_ref, o_ref):
    x = x_ref[...]
    keep = jnp.abs(x.astype(jnp.float32)) >= thr_ref[0]
    o_ref[...] = jnp.where(keep, x, jnp.zeros_like(x))


def _vmem_capacity_bytes():
    try:
        return int(pltpu.get_tpu_info().vmem_capacity_bytes)
    except Exception:
        return 64 * 1024 * 1024  # conservative default (v7x per-TC VMEM)


def _choose_layout(n_elem, itemsize, vmem_cap):
    """Pick (lane, rows, block_rows) for a lane-dense (rows, 128) slab."""
    lane = _LANE
    rows = pl.cdiv(n_elem, lane)
    sub = max(8, 32 // itemsize)  # sublane multiple: 8 f32, 16 bf16, 32 int8

    if rows <= sub:
        # Full-extent block: exempt from the 8-sublane divisibility rule.
        return lane, rows, rows

    # Biggest block such that 2x(in) + 2x(out) double buffering fits easily:
    # ~8 MiB blocks on v7x (64 MiB VMEM), ~16 MiB on v5e/v6e (128 MiB VMEM).
    blk_bytes = min(16 * 1024 * 1024, vmem_cap // 8)
    block_rows = max(sub, (blk_bytes // (lane * itemsize)) // sub * sub)

    # Keep the grid multi-step so dimension_semantics=("parallel",) can spread
    # work across both v7x TensorCores (and hide per-step overhead).
    steps = 4 if rows >= 4 * sub else 2
    block_rows = min(block_rows, max(sub, (rows // steps) // sub * sub))
    return lane, rows, block_rows


def _topk_mask_pallas(x2d, thr, block_rows, lane, vmem_limit):
    rows = x2d.shape[0]
    grid = (pl.cdiv(rows, block_rows),)
    return pl.pallas_call(
        _topk_mask_kernel,
        out_shape=jax.ShapeDtypeStruct(x2d.shape, x2d.dtype),
        grid_spec=pltpu.PrefetchScalarGridSpec(
            num_scalar_prefetch=1,  # thr -> SMEM
            grid=grid,
            in_specs=[pl.BlockSpec((block_rows, lane), lambda i, thr_ref: (i, 0))],
            out_specs=pl.BlockSpec((block_rows, lane), lambda i, thr_ref: (i, 0)),
        ),
        compiler_params=pltpu.CompilerParams(
            dimension_semantics=("parallel",),
            vmem_limit_bytes=int(vmem_limit),
        ),
        # TODO(synk): add input_output_aliases={1: 0} when the caller can donate
        # x; left off so a non-donated input does not force a defensive copy.
    )(thr, x2d)


def _kth_magnitude(flat, k):
    """Exact k-th largest |flat| via bit-level binary search (31 count passes).

    Much cheaper than lax.top_k (a full sort) for k ~ ratio * n: each pass is a
    fused, bandwidth-bound compare+reduce over the tensor.
    """
    bits = lax.bitcast_convert_type(flat.astype(jnp.float32), jnp.int32)
    bits = bits & jnp.int32(0x7FFFFFFF)  # |x| bit pattern, monotone in |x|

    def body(_, carry):
        lo, hi = carry
        mid = lo + (hi - lo) // 2
        cnt = jnp.sum(bits >= mid, dtype=jnp.int32)
        ge = cnt >= jnp.int32(k)
        return jnp.where(ge, mid, lo), jnp.where(ge, hi, mid)

    lo0 = jnp.int32(0)
    hi0 = jnp.int32(0x7F800000 + 1)  # just above +inf's bit pattern
    lo, _ = lax.fori_loop(0, 31, body, (lo0, hi0))
    return lax.bitcast_convert_type(lo, jnp.float32)


def topk_prune(x, ratio):
    """Keep the int(ratio * numel) largest-|x| elements of x, zero the rest."""
    shape = x.shape
    n = x.size
    k = int(ratio * n)
    flat = x.reshape(-1)  # keep the input dtype end-to-end

    # TODO(synk): torch.topk + index_fill_ keeps exactly k indices on ties and
    # ranks NaN highest; the threshold formulation keeps every element tied
    # with the k-th magnitude and drops NaN.
    if k <= 0:
        thr = jnp.float32(jnp.inf)   # keep nothing (finite data)
    elif k >= n:
        thr = jnp.float32(0.0)       # keep everything
    else:
        thr = _kth_magnitude(flat, k)
    thr = jnp.reshape(thr, (1,)).astype(jnp.float32)

    vmem_cap = _vmem_capacity_bytes()
    lane, rows, block_rows = _choose_layout(
        n, jnp.dtype(x.dtype).itemsize, vmem_cap)
    vmem_limit = min(96 * 1024 * 1024, max(32 * 1024 * 1024, vmem_cap * 3 // 4))

    padded = rows * lane
    if padded != n:  # only the sub-lane remainder (< 128 elements) is padded
        flat_in = jnp.pad(flat, (0, padded - n))
    else:
        flat_in = flat
    x2d = flat_in.reshape(rows, lane)

    out2d = _topk_mask_pallas(x2d, thr, block_rows, lane, vmem_limit)
    out_flat = out2d.reshape(-1)
    if padded != n:
        out_flat = out_flat[:n]
    return out_flat.reshape(shape)


class TopkLayer:
    """JAX/Pallas re-implementation of TopkLayer.forward (TopkPruning.apply)."""

    def __init__(self, compress_ratio, shape=None):
        self.ratio = compress_ratio

    def __call__(self, x):
        return topk_prune(x, self.ratio)


if __name__ == "__main__":
    key = jax.random.PRNGKey(0)

    # Small NCHW activation, consistent with a pipeline-stage boundary tensor.
    N, C, H, W = 2, 4, 16, 16          # 2048 elements
    ratio = 0.25                       # keep top 25% by magnitude -> k = 512
    x = jax.random.normal(key, (N, C, H, W), jnp.float32)

    layer = TopkLayer(ratio, (N, C, H, W))
    out = jax.block_until_ready(layer(x))

    # Reference: faithful torch.topk + index_fill_ semantics in plain JAX.
    n = x.size
    k = int(ratio * n)
    flat = x.reshape(-1)
    _, idx = jax.lax.top_k(jnp.abs(flat), k)
    ref = (flat * jnp.zeros_like(flat).at[idx].set(1.0)).reshape(x.shape)

    assert out.shape == x.shape and out.dtype == x.dtype
    assert jnp.allclose(out, ref, atol=1e-6), "mismatch vs reference top-k pruning"
    assert int(jnp.sum(out != 0.0)) == k, "wrong number of surviving elements"

    # Ragged case: numel not a multiple of 128 exercises the remainder pad and
    # the partial/full-extent block path.
    x2 = jax.random.normal(jax.random.PRNGKey(0), (3, 5, 7), jnp.float32)  # 105
    out2 = jax.block_until_ready(topk_prune(x2, 0.3))
    k2 = int(0.3 * x2.size)
    flat2 = x2.reshape(-1)
    _, idx2 = jax.lax.top_k(jnp.abs(flat2), k2)
    ref2 = (flat2 * jnp.zeros_like(flat2).at[idx2].set(1.0)).reshape(x2.shape)
    assert jnp.allclose(out2, ref2, atol=1e-6), "mismatch on ragged-size input"
    assert int(jnp.sum(out2 != 0.0)) == k2

    print("KERNEL_OK")
</pallas_src>

<mosaic_0001>
module attributes {stable_mosaic.version = 11 : i64} {
  func.func @_topk_mask_kernel(%arg0: i32, %arg1: memref<1xf32, #tpu.memory_space<smem>>, %arg2: memref<8x128xf32, #tpu.memory_space<vmem>>, %arg3: memref<8x128xf32, #tpu.memory_space<vmem>>) attributes {dimension_semantics = [#tpu.dimension_semantics<parallel>], iteration_bounds = array<i64: 2>, scalar_prefetch = 1 : i64, scratch_operands = 0 : i64, tpu.core_type = #tpu.core_type<tc>, window_params = [{transform_indices = @transform_0, window_bounds = array<i64: 8, 128>}, {transform_indices = @transform_1, window_bounds = array<i64: 8, 128>}]} {
    %c0 = arith.constant 0 : index
    %c0_0 = arith.constant 0 : index
    %0 = vector.load %arg2[%c0, %c0_0] : memref<8x128xf32, #tpu.memory_space<vmem>>, vector<8x128xf32>
    %1 = math.absf %0 : vector<8x128xf32>
    %c0_1 = arith.constant 0 : index
    %2 = memref.load %arg1[%c0_1] : memref<1xf32, #tpu.memory_space<smem>>
    %3 = vector.broadcast %2 : f32 to vector<8x128xf32>
    %4 = arith.cmpf oge, %1, %3 : vector<8x128xf32>
    %cst = arith.constant 0.000000e+00 : f32
    %5 = vector.broadcast %cst : f32 to vector<8x128xf32>
    %6 = arith.select %4, %0, %5 : vector<8x128xi1>, vector<8x128xf32>
    %c0_2 = arith.constant 0 : index
    %c0_3 = arith.constant 0 : index
    %7 = vector.load %arg3[%c0_2, %c0_3] : memref<8x128xf32, #tpu.memory_space<vmem>>, vector<8x128xf32>
    tpu.vector_store %arg3[%c0_2, %c0_3], %6 {strides = array<i32>} : memref<8x128xf32, #tpu.memory_space<vmem>>, vector<8x128xf32>,
    return
  }
  func.func @transform_0(%arg0: i32, %arg1: memref<1xf32, #tpu.memory_space<smem>>) -> (i32, i32) {
    %c0_i32 = arith.constant 0 : i32
    %c0_i32_0 = arith.constant 0 : i32
    return %arg0, %c0_i32 : i32, i32
  }
  func.func @transform_1(%arg0: i32, %arg1: memref<1xf32, #tpu.memory_space<smem>>) -> (i32, i32) {
    %c0_i32 = arith.constant 0 : i32
    %c0_i32_0 = arith.constant 0 : i32
    return %arg0, %c0_i32 : i32, i32
  }
}

</mosaic_0001>

<bundles_post_ra>
// kernel: tpu_custom_call.1
= control target key start
LH: loop header
LB: loop body
LE: loop exit
PB: predicated region body
PF: predicated region fallthrough
CT: control target
= control target key end

     0   :  { %s544_s0 = inlined_call_operand.<no memory space> [shape: f32[1], index: 0, kind: input, shape index: {}]   ;;  %s545_s1 = inlined_call_operand.hbm [shape: f32[16,128], index: 1, kind: input, shape index: {}]   ;;  %s546_s2 = inlined_call_operand.hbm [shape: f32[16,128], index: 2, kind: output, shape index: {}]  }
   0x1   :  { %7 = sst [smem:[#allocation3]] %s544_s0 }
   0x2   :  { %8 = vsyncpa [#allocation5], 0 }
   0x3   :  { %10 = vsyncpa [#allocation5 + $0x1], 0 }
   0x4   :  { %11 = vsyncpa [#allocation6], 0 }
   0x5   :  { %13 = vsyncpa [#allocation6 + $0x1], 0  ;;  %s397_s11 = smov 0   ;;  %s399_s12 = smov 0  }
   0x6   :  { %s401_s13 = smov 0   ;;  %s403_s14 = smov 0  }
   0x7 LB: > { %s418_s0 = sadd.s32 4294967295, %s375_s14   ;;  %s225_s15 = sadd.s32 4294967294, %s375_s14   ;;  %s375_s14 = sphi %s403_s14, %s563_s14   ;;  %s371_s13 = sphi %s401_s13, %s562_s13   ;;  %s367_s12 = sphi %s399_s12, %s561_s12   ;;  %s363_s11 = sphi %s397_s11, %s560_s11  }
   0x8   : > { %s422_s16 = sadd.s32 1, %s375_s14   ;;  %s26_s17 = sadd.s32 1, %s371_s13 }
   0x9   : > { %s23_s18 = ssub.s32 %s375_s14, %s422_s16  ;;  %p33_p0 = scmp.ne.s32.totalorder %s371_s13, %s367_s12 }
   0xa   : > { %p24_p1 = scmp.eq.s32.totalorder %s23_s18, 0  ;;  %p34_p2 = scmp.eq.s32.totalorder %s375_s14, 0 }
   0xb   : > { %p39_p3 = scmp.ne.s32.totalorder %s367_s12, %s363_s11  ;;  %p40_p4 = scmp.eq.s32.totalorder %s418_s0, 0 }
   0xc   : > { %s434_s19 = scalar_select %p24_p1, %s371_s13, %s26_s17  }
   0xd   : > { %p436_p5 = por %p34_p2, %p33_p0  ;;  %p440_p6 = por %p40_p4, %p39_p3 }
   0xe   : > { %p63_p7 = scmp.eq.s32.totalorder %s418_s0, 1  ;;  %p69_p8 = scmp.eq.s32.totalorder %s225_s15, 1 }
   0xf   : > { %s550_s21 = scalar_select %p440_p6, 1, 0 }
  0x10   : > { %p249_p10 = scmp.lt.s32.totalorder %s375_s14, 2  ;;  %p447_p11 = por %p63_p7, %p33_p0 }
  0x11   : > { %p451_p12 = por %p69_p8, %p39_p3  ;;  %s89_s24 = sand.u32 1, %s371_s13  }
  0x12   : > { %s551_s22 = scalar_select %p447_p11, 1, 0 }
  0x13   : > { %s552_s23 = scalar_select %p451_p12, 1, 0 }
  0x14   : > { %s229_s25 = sshll.u32 %s375_s14, 7  ;;  %s228_s26 = sshll.u32 %s89_s24, 3 }
  0x15   : > { %s460_s29 = scalar_lea.hbm %s545_s1, %s229_s25  ;;  %s93_s30 = scalar_lea.vmem [#allocation4], %s228_s26 }
  0x16   : > { %s100_s3 = sshll.u32 %s93_s30, 4  ;;  %p464_p13 = pnand %p249_p10, %p436_p5  ;;  %s468_s3 = int_to_ptr.vmem [resolvable:$true] %s100_s3 }
  0x17   : > { %s90_s5 = scalar_lea.sflag [#allocation5], %s89_s24  ;;  %s283_s6 = scalar_lea.hbm %s460_s29, 128 }
  0x18   : > { %p284_p2 = scmp.ne.s32.totalorder %s460_s29, %s283_s6  ;;  %p285_p3 = pneg %p464_p13 }
  0x19   : > { %s288_s9 = scalar_lea.hbm %s545_s1, 256  ;;  %p289_p5 = scmp.lt.s32.totalorder %s460_s29, %s545_s1 }
  0x1a   : > { %p286_p4 = pnand %p285_p3, %p284_p2  ;;  %p290_p8 = scmp.lt.s32.totalorder %s288_s9, %s283_s6 }
  0x1c   : > { %p287_p7 = pneg %p286_p4  ;;  %p291_p10 = por %p290_p8, %p289_p5 }
  0x1e   : > { %p292_p9 = pnand %p291_p10, %p287_p7 }
  0x20   : > { %295 = shalt.err (!%p292_p9)
}
  0x21   : > { %s296_s17 = scalar_lea.vmem %s468_s3, 128  ;;  %s377_s18 = smov [#allocation4]  }
  0x22   : > { %p297_p0 = scmp.ne.s32.totalorder %s468_s3, %s296_s17  ;;  %s301_s20 = sshll.u32 %s377_s18, 4  ;;  %s302_s20 = int_to_ptr.vmem [resolvable:$false] %s301_s20 }
  0x23   : > { %s303_s24 = scalar_lea.vmem %s302_s20, 256  ;;  %p304_p4 = scmp.lt.s32.totalorder %s468_s3, %s302_s20 }
  0x24   : > { %p299_p1 = pnand %p297_p0, %p285_p3  ;;  %p305_p12 = scmp.lt.s32.totalorder %s303_s24, %s296_s17 }
  0x26   : > { %p300_p2 = pneg %p299_p1  ;;  %p306_p11 = por %p305_p12, %p304_p4 }
  0x28   : > { %p307_p6 = pnand %p306_p11, %p300_p2 }
  0x2a   : > { %310 = shalt.err (!%p307_p6)
}
  0x2b   : > { %244 = dma.hbm_to_vmem [thread:$0]  (!%p464_p13), %s460_s29, 128, %s468_s3, %s90_s5  }
  0x2c   : > { %p554_p9 = scmp.lt.s32.totalorder %s375_s14, 3  ;;  %p555_p7 = scmp.ge.s32.totalorder %s375_s14, 1 }
  0x2e   : > { %p106_p0 = pnand %p555_p7, %p554_p9 }
  0x2f   : > { %s495_s25 = sand.u32 (!%p106_p0), 1, %s367_s12   ;;  %p556_p6 = scmp.ne.s32.totalorder (!%p106_p0), %s550_s21, 0 }
  0x30   : > { %109 = sbr.rel (%p106_p0) target bundleno = 79 (0x4f), region = 24  ;;  %s231_s26 = sshll.u32 (!%p106_p0), %s495_s25, 3 }
  0x31   : > { %s112_s27 = scalar_lea.sflag (!%p106_p0), [#allocation5], %s495_s25  ;;  %s115_s28 = scalar_lea.vmem (!%p106_p0), [#allocation4], %s231_s26 }
  0x35   : > { %354 = dma.done.wait (%p556_p6), %s112_s27, 128  }
  0x36   : > { %356 = vsyncadd (%p556_p6), %s112_s27, 4294967168  ;;  %s136_s29 = sld [smem:[#allocation3]]  ;;  %v134_v0 = vld [vmem:[%s115_s28] sm:$0xff]  ;;  %s133_s30 = scalar_lea.vmem [#allocation7], %s231_s26 }
  0x37   : > { %s155_s3 = sshll.u32 %s133_s30, 4  ;;  %s234_s4 = sshll.u32 %s418_s0, 7  ;;  %v135_v2 = vand.u32 2147483647, %v134_v0  ;;  %s504_s3 = int_to_ptr.vmem [resolvable:$true] %s155_s3 }
  0x38   : > { %s153_s21 = scalar_lea.hbm %s546_s2, %s234_s4  ;;  %s142_s7 = scalar_lea.sflag [#allocation6], %s495_s25 }
  0x39   : > { %s311_s8 = scalar_lea.vmem %s504_s3, 128  ;;  %p557_p12 = scmp.ne.s32.totalorder %s551_s22, 0 }
  0x3a   : > { %p312_p11 = scmp.ne.s32.totalorder %s504_s3, %s311_s8  ;;  %s378_s0 = smov [#allocation7]  }
  0x3b   : > { %s315_s9 = sshll.u32 %s378_s0, 4  ;;  %s316_s9 = int_to_ptr.vmem [resolvable:$false] %s315_s9 }
  0x3c   : > { %v137_v1 = vstv %s136_s29  ;;  %p313_p13 = pnand %p312_p11, %p557_p12  ;;  %s317_s10 = scalar_lea.vmem %s316_s9, 256 }
  0x3d   : > { %vm138_vm0 = vcmp.ge.f32.partialorder %v135_v2, %v137_v1  ;;  %p318_p3 = scmp.lt.s32.totalorder %s504_s3, %s316_s9  ;;  %p319_p5 = scmp.lt.s32.totalorder %s317_s10, %s311_s8 }
  0x3e   : > { %v139_v3 = vsel %vm138_vm0, %v134_v0, 0.0  ;;  %p314_p1 = pneg %p313_p13 }
  0x3f   : > { %140 = vst [vmem:[%s133_s30] sm:$0xff] %v139_v3  ;;  %p320_p8 = por %p319_p5, %p318_p3 }
  0x41   : > { %p321_p10 = pnand %p320_p8, %p314_p1 }
  0x43   : > { %324 = shalt.err (!%p321_p10)
}
  0x44   : > { %s325_s15 = scalar_lea.hbm %s153_s21, 128  ;;  %s329_s20 = scalar_lea.hbm %s546_s2, 256 }
  0x45   : > { %p326_p2 = scmp.ne.s32.totalorder %s153_s21, %s325_s15  ;;  %p330_p7 = scmp.lt.s32.totalorder %s153_s21, %s546_s2 }
  0x46   : > { %p331_p0 = scmp.lt.s32.totalorder %s329_s20, %s325_s15 }
  0x47   : > { %p327_p4 = pnand %p326_p2, %p557_p12 }
  0x48   : > { %p332_p6 = por %p331_p0, %p330_p7 }
  0x49   : > { %p328_p9 = pneg %p327_p4 }
  0x4b   : > { %p333_p11 = pnand %p332_p6, %p328_p9 }
  0x4d   : > { %336 = shalt.err (!%p333_p11)
}
  0x4e   : > { %239 = dma.vmem_to_hbm [thread:$0]  (%p557_p12), %s504_s3, 128, %s153_s21, %s142_s7  }
  0x4f PF: > { %s167_s26 = sand.u32 1, %s363_s11   ;;  %p558_p13 = scmp.ne.s32.totalorder %s552_s23, 0 }
  0x50   : > { %p559_p1 = scmp.ge.s32.totalorder %s375_s14, 2  ;;  %s168_s27 = scalar_lea.sflag [#allocation6], %s167_s26 }
  0x52   : > { %p246_p3 = pnand %p559_p1, %p558_p13 }
  0x54   : > { %p247_p5 = pneg %p246_p3 }
  0x56   : > { %358 = dma.done.wait (%p247_p5), %s168_s27, 128  }
  0x57   : > { %360 = vsyncadd (%p247_p5), %s168_s27, 4294967168  ;;  %p16_p8 = scmp.ge.s32.totalorder %s422_s16, 4   ;;  %s560_s11 = smov %s367_s12 }
  0x58   : > { %s561_s12 = smov %s371_s13  ;;  %s562_s13 = smov %s434_s19 }
  0x59   : > { %s563_s14 = smov %s422_s16  ;;  %18 = sbr.rel (!%p16_p8) target bundleno = 7 (0x7), region = 69 }
  0x5e   :  { %173 = vsyncpa [#allocation5], 1 }
  0x5f   :  { %175 = vsyncpa [#allocation5 + $0x1], 1 }
  0x60   :  { %176 = vsyncpa [#allocation6], 1 }
  0x61   :  { %178 = vsyncpa [#allocation6 + $0x1], 1 }

</bundles_post_ra>
